<compile_context>
chip_gen: v7x
topology: tpu7x:2x2x1
jax: 0.10.0
libtpu: 0.0.40
codegen_flags: <defaults>
</compile_context>

<pallas_src>
import numpy as np
import jax
import jax.numpy as jnp
from jax import lax
from jax.experimental import pallas as pl
from jax.experimental.pallas import tpu as pltpu

NEG = -1.0e30  # plain Python float "-inf" sentinel (never a captured jnp const)


def _logaddexp(a, b):
    m = jnp.maximum(a, b)
    return m + jnp.log(jnp.exp(a - m) + jnp.exp(b - m))


def _make_rnnt_kernel(blank, T, U, C, t_tile, n_t):
    """Kernel factory. Grid = (B, n_t); T is streamed in chunks of t_tile."""

    def kernel(act_lens_ref, label_lens_ref,      # scalar prefetch (SMEM)
               labels_ref, acts_ref,              # VMEM input blocks
               cost_ref,                          # (1,1,1) per-batch output
               blank_scr, label_scr):             # persistent VMEM scratch (T_pad, U)
        b = pl.program_id(0)
        tc = pl.program_id(1)

        @pl.when(tc == 0)
        def _():
            cost_ref[...] = jnp.zeros((1, 1, 1), jnp.float32)

        # ---- phase 1: streamed log-softmax for this T chunk ----------------
        x = acts_ref[0].astype(jnp.float32)                       # (t_tile, U, C)
        m = jnp.max(x, axis=-1)                                   # (t_tile, U)
        lse = m + jnp.log(jnp.sum(jnp.exp(x - m[..., None]), axis=-1))

        blank_oh = (lax.broadcasted_iota(jnp.int32, (1, C), 1) == blank
                    ).astype(jnp.float32)                         # (1, C)
        lab = labels_ref[0]                                       # (U, 1) int32
        label_oh = (lab == lax.broadcasted_iota(jnp.int32, (U, C), 1)
                    ).astype(jnp.float32)                         # (U, C)

        blank_chunk = jnp.sum(x * blank_oh, axis=-1) - lse        # (t_tile, U)
        label_chunk = jnp.sum(x * label_oh[None, :, :], axis=-1) - lse

        # mask rows past the true T (partial last chunk is padded with NEG)
        t0 = tc * t_tile
        t_glob = t0 + lax.broadcasted_iota(jnp.int32, (t_tile, U), 0)
        valid = t_glob < T
        blank_chunk = jnp.where(valid, blank_chunk, NEG)
        label_chunk = jnp.where(valid, label_chunk, NEG)

        blank_scr[pl.ds(t0, t_tile), :] = blank_chunk
        label_scr[pl.ds(t0, t_tile), :] = label_chunk

        # ---- phase 2: alpha DP once all T chunks are resident ---------------
        @pl.when(tc == n_t - 1)
        def _():
            t_len = act_lens_ref[b]
            u_len = label_lens_ref[b]
            u_lane = lax.broadcasted_iota(jnp.int32, (1, U), 1)

            def shift1(row):  # row[u] -> row[u-1], NEG fill at u=0
                return jnp.concatenate(
                    [jnp.full((1, 1), NEG, jnp.float32), row[:, :U - 1]], axis=1)

            def linrec(A, Bv):
                # x[0] = Bv[0]; x[u] = logaddexp(A[u] + x[u-1], Bv[u])
                # Hillis-Steele doubling scan (log-semiring) over the U axis.
                k = 1
                while k < U:
                    A_sh = jnp.concatenate(
                        [jnp.zeros((1, k), jnp.float32), A[:, :U - k]], axis=1)
                    B_sh = jnp.concatenate(
                        [jnp.full((1, k), NEG, jnp.float32), Bv[:, :U - k]], axis=1)
                    Bv = _logaddexp(B_sh + A, Bv)
                    A = A_sh + A
                    k *= 2
                return Bv

            # row t = 0: alpha[0,u] = sum_{v<u} label_lp[0,v]
            lab_row0 = label_scr[pl.ds(0, 1), :]                  # (1, U)
            c0 = jnp.where(u_lane == 0, 0.0, NEG).astype(jnp.float32)
            alpha0 = linrec(shift1(lab_row0), c0)
            sel0 = jnp.where(t_len == 1, alpha0, jnp.full_like(alpha0, NEG))

            def step(t, carry):
                prev, sel = carry
                blank_prev = blank_scr[pl.ds(t - 1, 1), :]        # (1, U)
                lab_row = label_scr[pl.ds(t, 1), :]               # (1, U)
                c = prev + blank_prev                             # "from above"
                alpha = linrec(shift1(lab_row), c)
                sel = jnp.where(t == t_len - 1, alpha, sel)
                return alpha, sel

            _, sel = lax.fori_loop(1, T, step, (alpha0, sel0))

            alpha_fin = jnp.sum(jnp.where(u_lane == u_len, sel, 0.0))
            blank_row = blank_scr[pl.ds(t_len - 1, 1), :]
            blank_fin = jnp.sum(jnp.where(u_lane == u_len, blank_row, 0.0))
            cost_ref[...] = jnp.reshape(-(alpha_fin + blank_fin), (1, 1, 1))

    return kernel


def rnnt_loss(acts, labels, act_lens, label_lens, blank=0, reduction="mean",
              t_tile=None):
    """Pallas-TPU RNNT loss forward. acts: (B, T, U, C) logits (pre-log_softmax)."""
    B, T, U, C = acts.shape
    max_label = labels.shape[1]
    assert max_label == U - 1

    # host-side label padding to length U (padded entry is never consumed)
    labels_p = jnp.concatenate(
        [labels.astype(jnp.int32), jnp.zeros((B, 1), jnp.int32)],
        axis=1).reshape(B, U, 1)

    if t_tile is None:
        row_bytes = U * C * acts.dtype.itemsize
        t_tile = int(max(1, min(T, (2 * 1024 * 1024) // max(1, row_bytes))))
    n_t = -(-T // t_tile)
    t_pad = n_t * t_tile

    acts_block_bytes = t_tile * U * C * acts.dtype.itemsize
    scratch_bytes = 2 * t_pad * U * 4
    vmem_bytes = int(min(64 * 1024 * 1024,
                         4 * acts_block_bytes + 2 * scratch_bytes
                         + 16 * 1024 * 1024))

    costs = pl.pallas_call(
        _make_rnnt_kernel(blank, T, U, C, t_tile, n_t),
        out_shape=jax.ShapeDtypeStruct((B, 1, 1), jnp.float32),
        grid_spec=pltpu.PrefetchScalarGridSpec(
            num_scalar_prefetch=2,                 # act_lens, label_lens -> SMEM
            grid=(B, n_t),
            in_specs=[
                pl.BlockSpec((1, U, 1), lambda b, tc, al, ll: (b, 0, 0)),
                pl.BlockSpec((1, t_tile, U, C),
                             lambda b, tc, al, ll: (b, tc, 0, 0)),
            ],
            out_specs=pl.BlockSpec((1, 1, 1), lambda b, tc, al, ll: (b, 0, 0)),
            scratch_shapes=[
                pltpu.VMEM((t_pad, U), jnp.float32),   # blank log-probs
                pltpu.VMEM((t_pad, U), jnp.float32),   # label log-probs
            ],
        ),
        compiler_params=pltpu.CompilerParams(
            dimension_semantics=("parallel", "arbitrary"),
            vmem_limit_bytes=vmem_bytes),
    )(act_lens.astype(jnp.int32), label_lens.astype(jnp.int32), labels_p, acts)

    costs = costs[:, 0, 0]
    if reduction in ("sum", "mean"):
        out = jnp.sum(costs)[None]
        if reduction == "mean":
            out = out / B                              # matches _RNNT: /= minibatch
        return out
    return costs


# ----------------------- pure-numpy reference (for checking) ----------------
def rnnt_loss_ref(acts, labels, act_lens, label_lens, blank=0, reduction="mean"):
    acts = np.asarray(acts, dtype=np.float64)
    labels = np.asarray(labels)
    B, T, U, C = acts.shape
    mx = acts.max(-1, keepdims=True)
    lp = acts - mx - np.log(np.sum(np.exp(acts - mx), -1, keepdims=True))
    costs = np.zeros(B)
    for bi in range(B):
        Tb, Ub = int(act_lens[bi]), int(label_lens[bi])
        alpha = np.full((Tb, Ub + 1), -np.inf)
        alpha[0, 0] = 0.0
        for t in range(Tb):
            for u in range(Ub + 1):
                if t == 0 and u == 0:
                    continue
                cands = []
                if t > 0:
                    cands.append(alpha[t - 1, u] + lp[bi, t - 1, u, blank])
                if u > 0:
                    cands.append(alpha[t, u - 1] + lp[bi, t, u - 1, labels[bi, u - 1]])
                alpha[t, u] = np.logaddexp.reduce(cands)
        costs[bi] = -(alpha[Tb - 1, Ub] + lp[bi, Tb - 1, Ub, blank])
    if reduction in ("sum", "mean"):
        out = np.array([costs.sum()])
        if reduction == "mean":
            out = out / B
        return out
    return costs


if __name__ == "__main__":
    B, T, maxU, C = 2, 8, 4, 16
    U = maxU + 1

    key = jax.random.PRNGKey(0)
    k1, k2 = jax.random.split(key)
    acts = jax.random.normal(k1, (B, T, U, C), dtype=jnp.float32)
    labels = jax.random.randint(k2, (B, maxU), 1, C, dtype=jnp.int32)
    act_lens = jnp.array([T, T - 2], dtype=jnp.int32)
    label_lens = jnp.array([maxU, maxU - 1], dtype=jnp.int32)

    out = rnnt_loss(acts, labels, act_lens, label_lens, blank=0, reduction="mean")
    out = jax.block_until_ready(out)

    ref = rnnt_loss_ref(np.asarray(acts), np.asarray(labels),
                        np.asarray(act_lens), np.asarray(label_lens),
                        blank=0, reduction="mean")
    np.testing.assert_allclose(np.asarray(out), ref, rtol=1e-4, atol=1e-3)
    print("KERNEL_OK")
</pallas_src>

<mosaic_0001>
module attributes {stable_mosaic.version = 11 : i64} {
  func.func @kernel(%arg0: i32, %arg1: i32, %arg2: memref<2xi32, #tpu.memory_space<smem>>, %arg3: memref<2xi32, #tpu.memory_space<smem>>, %arg4: memref<1x5x1xi32, #tpu.memory_space<vmem>>, %arg5: memref<1x8x5x16xf32, #tpu.memory_space<vmem>>, %arg6: memref<1x1x1xf32, #tpu.memory_space<vmem>>, %arg7: memref<8x5xf32, #tpu.memory_space<vmem>>, %arg8: memref<8x5xf32, #tpu.memory_space<vmem>>) attributes {dimension_semantics = [#tpu.dimension_semantics<parallel>, #tpu.dimension_semantics<arbitrary>], iteration_bounds = array<i64: 2, 1>, scalar_prefetch = 2 : i64, scratch_operands = 2 : i64, tpu.core_type = #tpu.core_type<tc>, window_params = [{transform_indices = @transform_0, window_bounds = array<i64: 1, 5, 1>}, {transform_indices = @transform_1, window_bounds = array<i64: 1, 8, 5, 16>}, {transform_indices = @transform_2, window_bounds = array<i64: 1, 1, 1>}]} {
    %c0_i32 = arith.constant 0 : i32
    %0 = arith.cmpi eq, %arg1, %c0_i32 : i32
    %1 = arith.extui %0 : i1 to i32
    %c0_i32_0 = arith.constant 0 : i32
    %2 = arith.cmpi ne, %1, %c0_i32_0 : i32
    scf.if %2 {
      %cst_18 = arith.constant 0.000000e+00 : f32
      %52 = vector.broadcast %cst_18 : f32 to vector<1x1x1xf32>
      %c0_19 = arith.constant 0 : index
      %c0_20 = arith.constant 0 : index
      %c0_21 = arith.constant 0 : index
      %53 = vector.load %arg6[%c0_19, %c0_20, %c0_21] : memref<1x1x1xf32, #tpu.memory_space<vmem>>, vector<1x1x1xf32>
      tpu.vector_store %arg6[%c0_19, %c0_20, %c0_21], %52 {strides = array<i32>} : memref<1x1x1xf32, #tpu.memory_space<vmem>>, vector<1x1x1xf32>,
    } else {
    }
    %c0 = arith.constant 0 : index
    %c0_1 = arith.constant 0 : index
    %c0_2 = arith.constant 0 : index
    %c0_3 = arith.constant 0 : index
    %3 = vector.load %arg5[%c0, %c0_1, %c0_2, %c0_3] : memref<1x8x5x16xf32, #tpu.memory_space<vmem>>, vector<1x8x5x16xf32>
    %4 = vector.shape_cast %3 : vector<1x8x5x16xf32> to vector<8x5x16xf32>
    %cst = arith.constant dense<0xFF800000> : vector<8x5xf32>
    %5 = vector.multi_reduction <maximumf>, %4, %cst [2] : vector<8x5x16xf32> to vector<8x5xf32>
    %6 = vector.shape_cast %5 : vector<8x5xf32> to vector<8x5x1xf32>
    %7 = vector.broadcast %6 : vector<8x5x1xf32> to vector<8x5x16xf32>
    %8 = arith.subf %4, %7 : vector<8x5x16xf32>
    %9 = math.exp %8 : vector<8x5x16xf32>
    %cst_4 = arith.constant dense<0.000000e+00> : vector<8x5xf32>
    %10 = vector.multi_reduction <add>, %9, %cst_4 [2] : vector<8x5x16xf32> to vector<8x5xf32>
    %11 = math.log %10 : vector<8x5xf32>
    %12 = arith.addf %5, %11 : vector<8x5xf32>
    %13 = tpu.iota {dimensions = array<i32: 1>} : vector<1x16xi32>
    %c0_i32_5 = arith.constant 0 : i32
    %14 = vector.broadcast %c0_i32_5 : i32 to vector<1x16xi32>
    %15 = arith.cmpi eq, %13, %14 : vector<1x16xi32>
    %16 = arith.extui %15 : vector<1x16xi1> to vector<1x16xi32>
    %17 = arith.sitofp %16 : vector<1x16xi32> to vector<1x16xf32>
    %c0_6 = arith.constant 0 : index
    %c0_7 = arith.constant 0 : index
    %c0_8 = arith.constant 0 : index
    %18 = vector.load %arg4[%c0_6, %c0_7, %c0_8] : memref<1x5x1xi32, #tpu.memory_space<vmem>>, vector<1x5x1xi32>
    %19 = vector.shape_cast %18 : vector<1x5x1xi32> to vector<5x1xi32>
    %20 = tpu.iota {dimensions = array<i32: 1>} : vector<5x16xi32>
    %21 = vector.broadcast %19 : vector<5x1xi32> to vector<5x16xi32>
    %22 = arith.cmpi eq, %21, %20 : vector<5x16xi32>
    %23 = arith.extui %22 : vector<5x16xi1> to vector<5x16xi32>
    %24 = arith.sitofp %23 : vector<5x16xi32> to vector<5x16xf32>
    %25 = vector.shape_cast %17 : vector<1x16xf32> to vector<1x1x16xf32>
    %26 = vector.broadcast %25 : vector<1x1x16xf32> to vector<8x5x16xf32>
    %27 = arith.mulf %4, %26 : vector<8x5x16xf32>
    %cst_9 = arith.constant dense<0.000000e+00> : vector<8x5xf32>
    %28 = vector.multi_reduction <add>, %27, %cst_9 [2] : vector<8x5x16xf32> to vector<8x5xf32>
    %29 = arith.subf %28, %12 : vector<8x5xf32>
    %30 = vector.shape_cast %24 : vector<5x16xf32> to vector<1x5x16xf32>
    %31 = vector.broadcast %30 : vector<1x5x16xf32> to vector<8x5x16xf32>
    %32 = arith.mulf %4, %31 : vector<8x5x16xf32>
    %cst_10 = arith.constant dense<0.000000e+00> : vector<8x5xf32>
    %33 = vector.multi_reduction <add>, %32, %cst_10 [2] : vector<8x5x16xf32> to vector<8x5xf32>
    %34 = arith.subf %33, %12 : vector<8x5xf32>
    %c8_i32 = arith.constant 8 : i32
    %35 = arith.muli %arg1, %c8_i32 : i32
    %36 = tpu.iota {dimensions = array<i32: 0>} : vector<8x5xi32>
    %37 = vector.broadcast %35 : i32 to vector<8x5xi32>
    %38 = arith.addi %37, %36 : vector<8x5xi32>
    %c8_i32_11 = arith.constant 8 : i32
    %39 = vector.broadcast %c8_i32_11 : i32 to vector<8x5xi32>
    %40 = arith.cmpi slt, %38, %39 : vector<8x5xi32>
    %cst_12 = arith.constant -1.000000e+30 : f32
    %41 = vector.broadcast %cst_12 : f32 to vector<8x5xf32>
    %42 = arith.select %40, %29, %41 : vector<8x5xi1>, vector<8x5xf32>
    %cst_13 = arith.constant -1.000000e+30 : f32
    %43 = vector.broadcast %cst_13 : f32 to vector<8x5xf32>
    %44 = arith.select %40, %34, %43 : vector<8x5xi1>, vector<8x5xf32>
    %45 = arith.index_cast %35 : i32 to index
    %c0_14 = arith.constant 0 : index
    %46 = vector.load %arg7[%45, %c0_14] : memref<8x5xf32, #tpu.memory_space<vmem>>, vector<8x5xf32>
    tpu.vector_store %arg7[%45, %c0_14], %42 {strides = array<i32>} : memref<8x5xf32, #tpu.memory_space<vmem>>, vector<8x5xf32>,
    %47 = arith.index_cast %35 : i32 to index
    %c0_15 = arith.constant 0 : index
    %48 = vector.load %arg8[%47, %c0_15] : memref<8x5xf32, #tpu.memory_space<vmem>>, vector<8x5xf32>
    tpu.vector_store %arg8[%47, %c0_15], %44 {strides = array<i32>} : memref<8x5xf32, #tpu.memory_space<vmem>>, vector<8x5xf32>,
    %c0_i32_16 = arith.constant 0 : i32
    %49 = arith.cmpi eq, %arg1, %c0_i32_16 : i32
    %50 = arith.extui %49 : i1 to i32
    %c0_i32_17 = arith.constant 0 : i32
    %51 = arith.cmpi ne, %50, %c0_i32_17 : i32
    scf.if %51 {
      %52 = arith.index_cast %arg0 : i32 to index
      %53 = memref.load %arg2[%52] : memref<2xi32, #tpu.memory_space<smem>>
      %54 = arith.index_cast %arg0 : i32 to index
      %55 = memref.load %arg3[%54] : memref<2xi32, #tpu.memory_space<smem>>
      %56 = tpu.iota {dimensions = array<i32: 1>} : vector<1x5xi32>
      %c0_18 = arith.constant 0 : index
      %c0_19 = arith.constant 0 : index
      %57 = vector.load %arg8[%c0_18, %c0_19] : memref<8x5xf32, #tpu.memory_space<vmem>>, vector<1x5xf32>
      %c0_i32_20 = arith.constant 0 : i32
      %58 = vector.broadcast %c0_i32_20 : i32 to vector<1x5xi32>
      %59 = arith.cmpi eq, %56, %58 : vector<1x5xi32>
      %cst_21 = arith.constant 0.000000e+00 : f32
      %cst_22 = arith.constant -1.000000e+30 : f32
      %60 = vector.broadcast %cst_21 : f32 to vector<1x5xf32>
      %61 = vector.broadcast %cst_22 : f32 to vector<1x5xf32>
      %62 = arith.select %59, %60, %61 : vector<1x5xi1>, vector<1x5xf32>
      %cst_23 = arith.constant -1.000000e+30 : f32
      %63 = vector.broadcast %cst_23 : f32 to vector<1x1xf32>
      %64 = vector.extract_strided_slice %57 {offsets = [0, 0], sizes = [1, 4], strides = [1, 1]} : vector<1x5xf32> to vector<1x4xf32>
      %65 = tpu.concatenate %63, %64 in 1 : vector<1x1xf32>, vector<1x4xf32> -> vector<1x5xf32>
      %cst_24 = arith.constant 0.000000e+00 : f32
      %66 = vector.broadcast %cst_24 : f32 to vector<1x1xf32>
      %67 = vector.extract_strided_slice %65 {offsets = [0, 0], sizes = [1, 4], strides = [1, 1]} : vector<1x5xf32> to vector<1x4xf32>
      %68 = tpu.concatenate %66, %67 in 1 : vector<1x1xf32>, vector<1x4xf32> -> vector<1x5xf32>
      %cst_25 = arith.constant -1.000000e+30 : f32
      %69 = vector.broadcast %cst_25 : f32 to vector<1x1xf32>
      %70 = vector.extract_strided_slice %62 {offsets = [0, 0], sizes = [1, 4], strides = [1, 1]} : vector<1x5xf32> to vector<1x4xf32>
      %71 = tpu.concatenate %69, %70 in 1 : vector<1x1xf32>, vector<1x4xf32> -> vector<1x5xf32>
      %72 = arith.addf %71, %65 : vector<1x5xf32>
      %73 = arith.maximumf %72, %62 : vector<1x5xf32>
      %74 = arith.subf %72, %73 : vector<1x5xf32>
      %75 = math.exp %74 : vector<1x5xf32>
      %76 = arith.subf %62, %73 : vector<1x5xf32>
      %77 = math.exp %76 : vector<1x5xf32>
      %78 = arith.addf %75, %77 : vector<1x5xf32>
      %79 = math.log %78 : vector<1x5xf32>
      %80 = arith.addf %73, %79 : vector<1x5xf32>
      %81 = arith.addf %68, %65 : vector<1x5xf32>
      %cst_26 = arith.constant 0.000000e+00 : f32
      %82 = vector.broadcast %cst_26 : f32 to vector<1x2xf32>
      %83 = vector.extract_strided_slice %81 {offsets = [0, 0], sizes = [1, 3], strides = [1, 1]} : vector<1x5xf32> to vector<1x3xf32>
      %84 = tpu.concatenate %82, %83 in 1 : vector<1x2xf32>, vector<1x3xf32> -> vector<1x5xf32>
      %cst_27 = arith.constant -1.000000e+30 : f32
      %85 = vector.broadcast %cst_27 : f32 to vector<1x2xf32>
      %86 = vector.extract_strided_slice %80 {offsets = [0, 0], sizes = [1, 3], strides = [1, 1]} : vector<1x5xf32> to vector<1x3xf32>
      %87 = tpu.concatenate %85, %86 in 1 : vector<1x2xf32>, vector<1x3xf32> -> vector<1x5xf32>
      %88 = arith.addf %87, %81 : vector<1x5xf32>
      %89 = arith.maximumf %88, %80 : vector<1x5xf32>
      %90 = arith.subf %88, %89 : vector<1x5xf32>
      %91 = math.exp %90 : vector<1x5xf32>
      %92 = arith.subf %80, %89 : vector<1x5xf32>
      %93 = math.exp %92 : vector<1x5xf32>
      %94 = arith.addf %91, %93 : vector<1x5xf32>
      %95 = math.log %94 : vector<1x5xf32>
      %96 = arith.addf %89, %95 : vector<1x5xf32>
      %97 = arith.addf %84, %81 : vector<1x5xf32>
      %cst_28 = arith.constant -1.000000e+30 : f32
      %98 = vector.broadcast %cst_28 : f32 to vector<1x4xf32>
      %99 = vector.extract_strided_slice %96 {offsets = [0, 0], sizes = [1, 1], strides = [1, 1]} : vector<1x5xf32> to vector<1x1xf32>
      %100 = tpu.concatenate %98, %99 in 1 : vector<1x4xf32>, vector<1x1xf32> -> vector<1x5xf32>
      %101 = arith.addf %100, %97 : vector<1x5xf32>
      %102 = arith.maximumf %101, %96 : vector<1x5xf32>
      %103 = arith.subf %101, %102 : vector<1x5xf32>
      %104 = math.exp %103 : vector<1x5xf32>
      %105 = arith.subf %96, %102 : vector<1x5xf32>
      %106 = math.exp %105 : vector<1x5xf32>
      %107 = arith.addf %104, %106 : vector<1x5xf32>
      %108 = math.log %107 : vector<1x5xf32>
      %109 = arith.addf %102, %108 : vector<1x5xf32>
      %c1_i32 = arith.constant 1 : i32
      %110 = arith.cmpi eq, %53, %c1_i32 : i32
      %cst_29 = arith.constant -1.000000e+30 : f32
      %111 = vector.broadcast %cst_29 : f32 to vector<1x5xf32>
      %112 = arith.select %110, %109, %111 : vector<1x5xf32>
      %c1_i32_30 = arith.constant 1 : i32
      %c7_i32 = arith.constant 7 : i32
      %113 = arith.addi %c1_i32_30, %c7_i32 : i32
      %c1_i32_31 = arith.constant 1 : i32
      %114:2 = scf.for %arg9 = %c1_i32_30 to %113 step %c1_i32_31 iter_args(%arg10 = %109, %arg11 = %112) -> (vector<1x5xf32>, vector<1x5xf32>)  : i32 {
        %c1_i32_43 = arith.constant 1 : i32
        %138 = arith.subi %arg9, %c1_i32_43 : i32
        %139 = arith.index_cast %138 : i32 to index
        %c0_44 = arith.constant 0 : index
        %140 = vector.load %arg7[%139, %c0_44] : memref<8x5xf32, #tpu.memory_space<vmem>>, vector<1x5xf32>
        %141 = arith.index_cast %arg9 : i32 to index
        %c0_45 = arith.constant 0 : index
        %142 = vector.load %arg8[%141, %c0_45] : memref<8x5xf32, #tpu.memory_space<vmem>>, vector<1x5xf32>
        %143 = arith.addf %arg10, %140 : vector<1x5xf32>
        %cst_46 = arith.constant -1.000000e+30 : f32
        %144 = vector.broadcast %cst_46 : f32 to vector<1x1xf32>
        %145 = vector.extract_strided_slice %142 {offsets = [0, 0], sizes = [1, 4], strides = [1, 1]} : vector<1x5xf32> to vector<1x4xf32>
        %146 = tpu.concatenate %144, %145 in 1 : vector<1x1xf32>, vector<1x4xf32> -> vector<1x5xf32>
        %cst_47 = arith.constant 0.000000e+00 : f32
        %147 = vector.broadcast %cst_47 : f32 to vector<1x1xf32>
        %148 = vector.extract_strided_slice %146 {offsets = [0, 0], sizes = [1, 4], strides = [1, 1]} : vector<1x5xf32> to vector<1x4xf32>
        %149 = tpu.concatenate %147, %148 in 1 : vector<1x1xf32>, vector<1x4xf32> -> vector<1x5xf32>
        %cst_48 = arith.constant -1.000000e+30 : f32
        %150 = vector.broadcast %cst_48 : f32 to vector<1x1xf32>
        %151 = vector.extract_strided_slice %143 {offsets = [0, 0], sizes = [1, 4], strides = [1, 1]} : vector<1x5xf32> to vector<1x4xf32>
        %152 = tpu.concatenate %150, %151 in 1 : vector<1x1xf32>, vector<1x4xf32> -> vector<1x5xf32>
        %153 = arith.addf %152, %146 : vector<1x5xf32>
        %154 = arith.maximumf %153, %143 : vector<1x5xf32>
        %155 = arith.subf %153, %154 : vector<1x5xf32>
        %156 = math.exp %155 : vector<1x5xf32>
        %157 = arith.subf %143, %154 : vector<1x5xf32>
        %158 = math.exp %157 : vector<1x5xf32>
        %159 = arith.addf %156, %158 : vector<1x5xf32>
        %160 = math.log %159 : vector<1x5xf32>
        %161 = arith.addf %154, %160 : vector<1x5xf32>
        %162 = arith.addf %149, %146 : vector<1x5xf32>
        %cst_49 = arith.constant 0.000000e+00 : f32
        %163 = vector.broadcast %cst_49 : f32 to vector<1x2xf32>
        %164 = vector.extract_strided_slice %162 {offsets = [0, 0], sizes = [1, 3], strides = [1, 1]} : vector<1x5xf32> to vector<1x3xf32>
        %165 = tpu.concatenate %163, %164 in 1 : vector<1x2xf32>, vector<1x3xf32> -> vector<1x5xf32>
        %cst_50 = arith.constant -1.000000e+30 : f32
        %166 = vector.broadcast %cst_50 : f32 to vector<1x2xf32>
        %167 = vector.extract_strided_slice %161 {offsets = [0, 0], sizes = [1, 3], strides = [1, 1]} : vector<1x5xf32> to vector<1x3xf32>
        %168 = tpu.concatenate %166, %167 in 1 : vector<1x2xf32>, vector<1x3xf32> -> vector<1x5xf32>
        %169 = arith.addf %168, %162 : vector<1x5xf32>
        %170 = arith.maximumf %169, %161 : vector<1x5xf32>
        %171 = arith.subf %169, %170 : vector<1x5xf32>
        %172 = math.exp %171 : vector<1x5xf32>
        %173 = arith.subf %161, %170 : vector<1x5xf32>
        %174 = math.exp %173 : vector<1x5xf32>
        %175 = arith.addf %172, %174 : vector<1x5xf32>
        %176 = math.log %175 : vector<1x5xf32>
        %177 = arith.addf %170, %176 : vector<1x5xf32>
        %178 = arith.addf %165, %162 : vector<1x5xf32>
        %cst_51 = arith.constant -1.000000e+30 : f32
        %179 = vector.broadcast %cst_51 : f32 to vector<1x4xf32>
        %180 = vector.extract_strided_slice %177 {offsets = [0, 0], sizes = [1, 1], strides = [1, 1]} : vector<1x5xf32> to vector<1x1xf32>
        %181 = tpu.concatenate %179, %180 in 1 : vector<1x4xf32>, vector<1x1xf32> -> vector<1x5xf32>
        %182 = arith.addf %181, %178 : vector<1x5xf32>
        %183 = arith.maximumf %182, %177 : vector<1x5xf32>
        %184 = arith.subf %182, %183 : vector<1x5xf32>
        %185 = math.exp %184 : vector<1x5xf32>
        %186 = arith.subf %177, %183 : vector<1x5xf32>
        %187 = math.exp %186 : vector<1x5xf32>
        %188 = arith.addf %185, %187 : vector<1x5xf32>
        %189 = math.log %188 : vector<1x5xf32>
        %190 = arith.addf %183, %189 : vector<1x5xf32>
        %c1_i32_52 = arith.constant 1 : i32
        %191 = arith.subi %53, %c1_i32_52 : i32
        %192 = arith.cmpi eq, %arg9, %191 : i32
        %193 = arith.select %192, %190, %arg11 : vector<1x5xf32>
        scf.yield %190, %193 : vector<1x5xf32>, vector<1x5xf32>
      }
      %c7_i32_32 = arith.constant 7 : i32
      %115 = vector.broadcast %55 : i32 to vector<1x5xi32>
      %116 = arith.cmpi eq, %56, %115 : vector<1x5xi32>
      %cst_33 = arith.constant 0.000000e+00 : f32
      %117 = vector.broadcast %cst_33 : f32 to vector<1x5xf32>
      %118 = arith.select %116, %114#1, %117 : vector<1x5xi1>, vector<1x5xf32>
      %119 = vector.shape_cast %118 : vector<1x5xf32> to vector<1x1x5xf32>
      %cst_34 = arith.constant dense<0.000000e+00> : vector<1xf32>
      %120 = vector.multi_reduction <add>, %119, %cst_34 [1, 2] : vector<1x1x5xf32> to vector<1xf32>
      %121 = vector.shape_cast %120 : vector<1xf32> to vector<1x1x1xf32>
      %122 = vector.extract %121[0, 0, 0] : f32 from vector<1x1x1xf32>
      %c1_i32_35 = arith.constant 1 : i32
      %123 = arith.subi %53, %c1_i32_35 : i32
      %124 = arith.index_cast %123 : i32 to index
      %c0_36 = arith.constant 0 : index
      %125 = vector.load %arg7[%124, %c0_36] : memref<8x5xf32, #tpu.memory_space<vmem>>, vector<1x5xf32>
      %126 = vector.broadcast %55 : i32 to vector<1x5xi32>
      %127 = arith.cmpi eq, %56, %126 : vector<1x5xi32>
      %cst_37 = arith.constant 0.000000e+00 : f32
      %128 = vector.broadcast %cst_37 : f32 to vector<1x5xf32>
      %129 = arith.select %127, %125, %128 : vector<1x5xi1>, vector<1x5xf32>
      %130 = vector.shape_cast %129 : vector<1x5xf32> to vector<1x1x5xf32>
      %cst_38 = arith.constant dense<0.000000e+00> : vector<1xf32>
      %131 = vector.multi_reduction <add>, %130, %cst_38 [1, 2] : vector<1x1x5xf32> to vector<1xf32>
      %132 = vector.shape_cast %131 : vector<1xf32> to vector<1x1x1xf32>
      %133 = vector.extract %132[0, 0, 0] : f32 from vector<1x1x1xf32>
      %134 = arith.addf %122, %133 : f32
      %cst_39 = arith.constant 0.000000e+00 : f32
      %135 = arith.subf %cst_39, %134 : f32
      %136 = vector.broadcast %135 : f32 to vector<1x1x1xf32>
      %c0_40 = arith.constant 0 : index
      %c0_41 = arith.constant 0 : index
      %c0_42 = arith.constant 0 : index
      %137 = vector.load %arg6[%c0_40, %c0_41, %c0_42] : memref<1x1x1xf32, #tpu.memory_space<vmem>>, vector<1x1x1xf32>
      tpu.vector_store %arg6[%c0_40, %c0_41, %c0_42], %136 {strides = array<i32>} : memref<1x1x1xf32, #tpu.memory_space<vmem>>, vector<1x1x1xf32>,
    } else {
    }
    return
  }
  func.func @transform_0(%arg0: i32, %arg1: i32, %arg2: memref<2xi32, #tpu.memory_space<smem>>, %arg3: memref<2xi32, #tpu.memory_space<smem>>) -> (i32, i32, i32) {
    %c0_i32 = arith.constant 0 : i32
    %c0_i32_0 = arith.constant 0 : i32
    %c0_i32_1 = arith.constant 0 : i32
    return %arg0, %c0_i32, %c0_i32_0 : i32, i32, i32
  }
  func.func @transform_1(%arg0: i32, %arg1: i32, %arg2: memref<2xi32, #tpu.memory_space<smem>>, %arg3: memref<2xi32, #tpu.memory_space<smem>>) -> (i32, i32, i32, i32) {
    %c0_i32 = arith.constant 0 : i32
    %c0_i32_0 = arith.constant 0 : i32
    %c0_i32_1 = arith.constant 0 : i32
    return %arg0, %arg1, %c0_i32, %c0_i32_0 : i32, i32, i32, i32
  }
  func.func @transform_2(%arg0: i32, %arg1: i32, %arg2: memref<2xi32, #tpu.memory_space<smem>>, %arg3: memref<2xi32, #tpu.memory_space<smem>>) -> (i32, i32, i32) {
    %c0_i32 = arith.constant 0 : i32
    %c0_i32_0 = arith.constant 0 : i32
    %c0_i32_1 = arith.constant 0 : i32
    return %arg0, %c0_i32, %c0_i32_0 : i32, i32, i32
  }
}

</mosaic_0001>

<bundles_post_ra>
// kernel: tpu_custom_call.1
= control target key start
LH: loop header
LB: loop body
LE: loop exit
PB: predicated region body
PF: predicated region fallthrough
CT: control target
= control target key end

     0   :  { %s1407_s0 = inlined_call_operand.vmem [shape: s32[2], index: 0, kind: input, shape index: {}]   ;;  %s1408_s2 = inlined_call_operand.vmem [shape: s32[2,5,1], index: 2, kind: input, shape index: {}]   ;;  %s1409_s3 = inlined_call_operand.vmem [shape: f32[2,8,5,16], index: 3, kind: input, shape index: {}]   ;;  %s1410_s4 = inlined_call_operand.vmem [shape: f32[2,1,1], index: 4, kind: output, shape index: {}]   ;;  %s1411_s1 = inlined_call_operand.vmem [shape: s32[2], index: 1, kind: input, shape index: {}]  }
   0x1   :  { %s9_s17 = sshll.u32 %s1407_s0, 4  ;;  %s13_s20 = sshll.u32 %s1411_s1, 4  ;;  %s10_s17 = int_to_ptr.vmem [resolvable:$true] %s9_s17  ;;  %s14_s20 = int_to_ptr.vmem [resolvable:$true] %s13_s20 }
   0x2   :  { %s967_s21 = scalar_lea.vmem %s10_s17, 16  ;;  %p972_p1 = scmp.lt.s32.totalorder %s10_s17, %s10_s17 }
   0x3   :  { %p968_p0 = scmp.ne.s32.totalorder %s10_s17, %s967_s21  ;;  %p973_p2 = scmp.lt.s32.totalorder %s967_s21, %s967_s21 }
   0x5   :  { %p974_p3 = por %p973_p2, %p972_p1 }
   0x7   :  { %p975_p4 = pnand %p974_p3, %p968_p0 }
   0x9   :  { %978 = shalt.err (!%p975_p4)  }
   0xa   :  { %s1041_s22 = smov [#allocation5]   ;;  %s979_s23 = scalar_lea.vmem %s14_s20, 16 }
   0xb   :  { %12 = dma.vmem_to_smem %s10_s17, 16, %s1041_s22, [#allocation4] }
   0xc   :  { %p980_p5 = scmp.ne.s32.totalorder %s14_s20, %s979_s23  ;;  %p984_p6 = scmp.lt.s32.totalorder %s14_s20, %s14_s20 }
   0xd   :  { %p985_p7 = scmp.lt.s32.totalorder %s979_s23, %s979_s23 }
   0xf   :  { %p986_p8 = por %p985_p7, %p984_p6 }
  0x11   :  { %p987_p9 = pnand %p986_p8, %p980_p5 }
  0x13   :  { %990 = shalt.err (!%p987_p9)  }
  0x14   :  { %s1042_s0 = smov [#allocation6]  }
  0x15   :  { %16 = dma.vmem_to_smem %s14_s20, 16, %s1042_s0, [#allocation4] }
  0x16   :  { %1015 = dma.done.wait [#allocation4], 32 }
  0x17   :  { %1016 = vsyncadd [#allocation4], 4294967264 }
  0x18   :  { %18 = sfence }
  0x19   :  { %s1083_s1 = smov 0   ;;  %s1085_s24 = smov 0  }
  0x1a   :  { %s1087_s25 = smov 0  }
  0x1b LB: > { %s36_s26 = sadd.s32 1, %s1023_s24  ;;  %p815_p10 = scmp.ge.s32.totalorder %s1027_s25, 1  ;;  %s1027_s25 = sphi %s1087_s25, %s24_s25   ;;  %s1023_s24 = sphi %s1085_s24, %s1416_s24   ;;  %s1019_s1 = sphi %s1083_s1, %s1415_s1  }
  0x1c   : > { %p38_p11 = scmp.ge.s32.totalorder %s36_s26, 2  ;;  %p152_p12 = scmp.lt.s32.totalorder %s1027_s25, 3 }
  0x1e   : > { %s1418_s26 = smov (%p38_p11, %s36_s26), 0  ;;  %p153_p13 = pnand %p815_p10, %p152_p12 }
  0x1f   : > { %p180_p0 = scmp.lt.s32.totalorder (!%p153_p13), %s1019_s1, 1  ;;  %v1043_v0 = vmov (!%p153_p13), 0   ;;  %vm211_vm0 = vcmask (!%p153_p13), 126976   ;;  %vm201_vm1 = vcmask (!%p153_p13), 0   ;;  %v1044_v18 = vmov (!%p153_p13), 0.0   ;;  %s1046_s13 = smov (!%p153_p13), 1  }
  0x20   : > { %156 = sbr.rel (%p153_p13) target bundleno = 1602 (0x642), region = 28  ;;  %898 = vset.pattern.permute.xlu0 (!%p153_p13), %v1043_v0  ;;  %v308_v22 = vlaneseq (!%p153_p13)  ;;  %v1045_v61 = vmov (!%p153_p13), -1e+30   ;;  %vm446_vm4 = vcmask (!%p153_p13), 1041409   ;;  %vm448_vm5 = vcmask (!%p153_p13), 1042434   ;;  %s1047_s14 = smov (!%p153_p13), 2  }
  0x21   : > { %vm450_vm6 = vcmask (!%p153_p13), 1043459   ;;  %vm452_vm7 = vcmask (!%p153_p13), 1044484   ;;  %vm454_vm8 = vcmask (!%p153_p13), 1045509   ;;  %vm456_vm9 = vcmask (!%p153_p13), 1046534   ;;  %s1048_s15 = smov (!%p153_p13), 4   ;;  %s1338_s16 = sld [smem:[#allocation6 + %s1019_s1]] (!%p153_p13) }
  0x22   : > { %v1167_v25 = vand.u32 (!%p153_p13), 127, %v308_v22  ;;  %vm458_vm10 = vcmask (!%p153_p13), 1047559   ;;  %vm512_vm11 = vcmask (!%p153_p13), 39936   ;;  %vm527_vm12 = vcmask (!%p153_p13), 7168   ;;  %s1343_s17 = sld [smem:[#allocation5 + %s1019_s1]] (!%p153_p13)  ;;  %s1366_s19 = smov (!%p153_p13), 1  }
  0x23   : > { %vm556_vm13 = vcmask (!%p153_p13), 15360   ;;  %vm580_vm14 = vcmask (!%p153_p13), 31744  }
  0x24   : > { %vm310_vm3 = vcmp.eq.s32.totalorder (!%p153_p13), %v1167_v25, 0 }
  0x25   : > { %v1213_v62 = vsel (!%p153_p13), %vm310_vm3, 0.0, %v1045_v61 }
  0x27   : > { %s1105_s27 = scalar_select %p180_p0, %s1019_s1, 1 }
  0x28   : > { %p594_p1 = scmp.eq.s32.totalorder %s1343_s17, 1 }
  0x29   : > { %s828_s28 = sshll.u32 %s1105_s27, 6  ;;  %s816_s6 = sshll.u32 %s1105_s27, 3 }
  0x2a   : > { %s192_s5 = scalar_lea.vmem %s1409_s3, %s828_s28  ;;  %s183_s9 = scalar_lea.vmem %s1408_s2, %s816_s6 }
  0x2b   : > { %v1111_v1 = vld [vmem:[%s192_s5] sm:$0x1f]  ;;  %v1113_v2 = vld [vmem:[%s192_s5 + $0x8] sm:$0x1f]  ;;  %v1117_v4 = vld [vmem:[%s192_s5 + $0x10] sm:$0x1f]  ;;  %s1151_s12 = scalar_lea.vmem %s1410_s4, %s1105_s27 }
  0x2c   : > { %v212_v3 = vsel %vm211_vm0, %v1111_v1, -inf  ;;  %v1119_v5 = vld [vmem:[%s192_s5 + $0x18] sm:$0x1f]  ;;  %v215_v6 = vsel %vm211_vm0, %v1113_v2, -inf  ;;  %v218_v7 = vsel %vm211_vm0, %v1117_v4, -inf }
  0x2d   : > { %213 = vmax.xlane.f32.xlu0 %v212_v3  ;;  %v1125_v8 = vld [vmem:[%s192_s5 + $0x20] sm:$0x1f]  ;;  %219 = vmax.xlane.f32.xlu1 %v218_v7  ;;  %v221_v9 = vsel %vm211_vm0, %v1119_v5, -inf  ;;  %v1129_v10 = vld [vmem:[%s192_s5 + $0x28] sm:$0x1f] }
  0x2e   : > { %v224_v11 = vsel %vm211_vm0, %v1125_v8, -inf  ;;  %v1133_v12 = vld [vmem:[%s192_s5 + $0x30] sm:$0x1f]  ;;  %v227_v13 = vsel %vm211_vm0, %v1129_v10, -inf  ;;  %v1137_v14 = vld [vmem:[%s192_s5 + $0x38] sm:$0x1f] }
  0x2f   : > { %v230_v15 = vsel %vm211_vm0, %v1133_v12, -inf  ;;  %v233_v16 = vsel %vm211_vm0, %v1137_v14, -inf  ;;  %v313_v17 = vld [vmem:[%s183_s9] sm:$0x1f]  ;;  %202 = vst.msk [vmem:[%s1151_s12] sm:$0x1] %vm201_vm1, %v1044_v18 }
  0x30   : > { %s595_s18 = scalar_select %p594_p1, 1, 0 }
  0x31   : > { %216 = vmax.xlane.f32.xlu0 %v215_v6  ;;  %222 = vmax.xlane.f32.xlu1 %v221_v9 }
  0x35   : > { %225 = vmax.xlane.f32.xlu0 %v224_v11  ;;  %228 = vmax.xlane.f32.xlu1 %v227_v13 }
  0x39   : > { %231 = vmax.xlane.f32.xlu0 %v230_v15  ;;  %234 = vmax.xlane.f32.xlu1 %v233_v16 }
  0x4f   : > { %315 = vperm.xlu0 %898, %v313_v17  }
  0xba   : > { %v1156_v19 = vpop.xlane.xlu0 %213  ;;  %v1169_v26 = vpop.xlane.xlu1 %219 }
  0xbb   : > { %v236_v23 = vsub.f32 %v1111_v1, %v1156_v19  ;;  %v238_v31 = vsub.f32 %v1117_v4, %v1169_v26 }
  0xbd   : > { %v244_v27 = vmul.f32 1.442695, %v236_v23  ;;  %v248_v39 = vmul.f32 1.442695, %v238_v31  ;;  %v1227_v23 = vsel %vm310_vm3, 1.0, %v1044_v18 }
  0xbe   : > { %v1158_v20 = vpop.xlane.xlu0 %216  ;;  %v1183_v34 = vpop.xlane.xlu1 %222 }
  0xbf   : > { %v237_v28 = vsub.f32 %v1113_v2, %v1158_v20  ;;  %899 = vpow2.f32 %v244_v27  ;;  %v239_v40 = vsub.f32 %v1119_v5, %v1183_v34 }
  0xc1   : > { %v246_v35 = vmul.f32 1.442695, %v237_v28  ;;  %v250_v43 = vmul.f32 1.442695, %v239_v40 }
  0xc2   : > { %v1160_v21 = vpop.xlane.xlu0 %225  ;;  %v1194_v44 = vpop.xlane.xlu1 %228 }
  0xc3   : > { %901 = vpow2.f32 %v246_v35  ;;  %v240_v45 = vsub.f32 %v1125_v8, %v1160_v21  ;;  %v241_v48 = vsub.f32 %v1129_v10, %v1194_v44 }
  0xc4   : > { %903 = vpow2.f32 %v248_v39 }
  0xc5   : > { %905 = vpow2.f32 %v250_v43  ;;  %v252_v49 = vmul.f32 1.442695, %v240_v45  ;;  %v254_v52 = vmul.f32 1.442695, %v241_v48 }
  0xc6   : > { %v1164_v24 = vpop.xlane.xlu0 %231  ;;  %v1202_v53 = vpop.xlane.xlu1 %234 }
  0xc7   : > { %907 = vpow2.f32 %v252_v49  ;;  %v242_v55 = vsub.f32 %v1133_v12, %v1164_v24  ;;  %v243_v57 = vsub.f32 %v1137_v14, %v1202_v53 }
  0xc8   : > { %909 = vpow2.f32 %v254_v52 }
  0xc9   : > { %v900_v47 = vpop.eup %899  ;;  %v256_v60 = vmul.f32 1.442695, %v242_v55  ;;  %v258_v63 = vmul.f32 1.442695, %v243_v57 }
  0xca   : > { %v260_v50 = vsel %vm211_vm0, %v900_v47, 0.0 }
  0xcb   : > { %911 = vpow2.f32 %v256_v60 }
  0xcc   : > { %913 = vpow2.f32 %v258_v63 }
  0xcd   : > { %v902_v51 = vpop.eup %901 }
  0xce   : > { %v316_v29 = vpop.permute.xlu0 %315  ;;  %v904_v54 = vpop.eup %903  ;;  %v263_v56 = vsel %vm211_vm0, %v902_v51, 0.0 }
  0xcf   : > { %vm317_vm2 = vcmp.eq.s32.totalorder %v316_v29, %v1167_v25  ;;  %v266_v58 = vsel %vm211_vm0, %v904_v54, 0.0  ;;  %v906_v59 = vpop.eup %905  ;;  %v321_v29 = vmul.f32 %v1227_v23, %v1113_v2 }
  0xd0   : > { %v1175_v30 = vsel %vm317_vm2, 1.0, %v1044_v18  ;;  %v269_v0 = vsel %vm211_vm0, %v906_v59, 0.0  ;;  %v322_v18 = vmul.f32 %v1227_v23, %v1117_v4 }
  0xd1   : > { %v363_v32 = vmul.f32 %v1175_v30, %v1119_v5  ;;  %v360_v33 = vmul.f32 %v1175_v30, %v1111_v1  ;;  %v361_v38 = vmul.f32 %v1175_v30, %v1113_v2  ;;  %v362_v42 = vmul.f32 %v1175_v30, %v1117_v4  ;;  %v908_v3 = vpop.eup %907 }
  0xd2   : > { %v910_v6 = vpop.eup %909  ;;  %v272_v7 = vsel %vm211_vm0, %v908_v3, 0.0  ;;  %v364_v17 = vmul.f32 %v1175_v30, %v1125_v8  ;;  %v365_v28 = vmul.f32 %v1175_v30, %v1129_v10  ;;  %v334_v2 = vsel %vm211_vm0, %v322_v18, 0.0 }
  0xd3   : > { %v377_v36 = vsel %vm211_vm0, %v363_v32, 0.0  ;;  %v368_v37 = vsel %vm211_vm0, %v360_v33, 0.0  ;;  %v371_v41 = vsel %vm211_vm0, %v361_v38, 0.0  ;;  %v374_v46 = vsel %vm211_vm0, %v362_v42, 0.0 }
  0xd4   : > { %378 = vadd.xlane.f32.xlu0 %v377_v36  ;;  %369 = vadd.xlane.f32.xlu1 %v368_v37  ;;  %v275_v9 = vsel %vm211_vm0, %v910_v6, 0.0  ;;  %v380_v27 = vsel %vm211_vm0, %v364_v17, 0.0  ;;  %v383_v31 = vsel %vm211_vm0, %v365_v28, 0.0  ;;  %v366_v32 = vmul.f32 %v1175_v30, %v1133_v12 }
  0xd5   : > { %v912_v11 = vpop.eup %911  ;;  %v331_v33 = vsel %vm211_vm0, %v321_v29, 0.0  ;;  %v367_v36 = vmul.f32 %v1175_v30, %v1137_v14  ;;  %v324_v37 = vmul.f32 %v1227_v23, %v1125_v8  ;;  %v326_v4 = vmul.f32 %v1227_v23, %v1133_v12 }
  0xd6   : > { %v914_v13 = vpop.eup %913  ;;  %v278_v15 = vsel %vm211_vm0, %v912_v11, 0.0  ;;  %v386_v35 = vsel %vm211_vm0, %v366_v32, 0.0 }
  0xd7   : > { %v281_v16 = vsel %vm211_vm0, %v914_v13, 0.0  ;;  %v389_v38 = vsel %vm211_vm0, %v367_v36, 0.0  ;;  %v340_v39 = vsel %vm211_vm0, %v324_v37, 0.0  ;;  %v346_v40 = vsel %vm211_vm0, %v326_v4, 0.0 }
  0xd8   : > { %372 = vadd.xlane.f32.xlu1 %v371_v41 }
  0xdc   : > { %375 = vadd.xlane.f32.xlu1 %v374_v46 }
  0xe0   : > { %261 = vadd.xlane.f32.xlu1 %v260_v50 }
  0xe4   : > { %264 = vadd.xlane.f32.xlu1 %v263_v56 }
  0xe8   : > { %267 = vadd.xlane.f32.xlu1 %v266_v58 }
  0xea   : > { %535 = vrot.lane.b32.xlu0 %v1213_v62, %s1046_s13 }
  0xec   : > { %270 = vadd.xlane.f32.xlu1 %v269_v0 }
  0xf0   : > { %273 = vadd.xlane.f32.xlu1 %v272_v7  ;;  %v415_v7 = vshrl.u32 %v308_v22, 7 }
  0xf4   : > { %276 = vadd.xlane.f32.xlu1 %v275_v9 }
  0xf8   : > { %279 = vadd.xlane.f32.xlu1 %v278_v15 }
  0xfc   : > { %282 = vadd.xlane.f32.xlu1 %v281_v16 }
 0x100   : > { %381 = vadd.xlane.f32.xlu1 %v380_v27 }
 0x104   : > { %384 = vadd.xlane.f32.xlu1 %v383_v31 }
 0x108   : > { %387 = vadd.xlane.f32.xlu1 %v386_v35 }
 0x109   : > { %332 = vadd.xlane.f32.xlu0 %v331_v33 }
 0x10c   : > { %390 = vadd.xlane.f32.xlu1 %v389_v38 }
 0x10d   : > { %335 = vadd.xlane.f32.xlu0 %v334_v2 }
 0x111   : > { %341 = vadd.xlane.f32.xlu0 %v340_v39 }
 0x115   : > { %347 = vadd.xlane.f32.xlu0 %v346_v40 }
 0x161   : > { %v370_v30 = vpop.xlane.xlu1 %369  ;;  %v379_v17 = vpop.xlane.xlu0 %378 }
 0x165   : > { %v373_v41 = vpop.xlane.xlu1 %372 }
 0x169   : > { %v376_v42 = vpop.xlane.xlu1 %375 }
 0x16d   : > { %v262_v43 = vpop.xlane.xlu1 %261 }
 0x16e   : > { %915 = vlog2.f32 %v262_v43 }
 0x171   : > { %v265_v45 = vpop.xlane.xlu1 %264 }
 0x172   : > { %917 = vlog2.f32 %v265_v45 }
 0x175   : > { %v268_v46 = vpop.xlane.xlu1 %267 }
 0x176   : > { %919 = vlog2.f32 %v268_v46 }
 0x178   : > { %v916_v12 = vpop.eup %915 }
 0x179   : > { %v271_v8 = vpop.xlane.xlu1 %270  ;;  %v285_v58 = vmul.f32 0.6931472, %v916_v12  ;;  %v536_v12 = vpop.permute.xlu0 %535 }
 0x17a   : > { %921 = vlog2.f32 %v271_v8 }
 0x17b   : > { %v1259_v9 = vadd.f32 %v285_v58, %v1156_v19  ;;  %v1273_v19 = vsub.s32 %v1167_v25, %v415_v7 }
 0x17c   : > { %v918_v49 = vpop.eup %917 }
 0x17d   : > { %v274_v47 = vpop.xlane.xlu1 %273  ;;  %v287_v55 = vmul.f32 0.6931472, %v918_v49  ;;  %v538_v49 = vsel %vm527_vm12, -1e+30, %v536_v12 }
 0x17e   : > { %923 = vlog2.f32 %v274_v47 }
 0x17f   : > { %v1252_v63 = vadd.f32 %v287_v55, %v1158_v20 }
 0x180   : > { %v920_v51 = vpop.eup %919 }
 0x181   : > { %v277_v48 = vpop.xlane.xlu1 %276  ;;  %v289_v56 = vmul.f32 0.6931472, %v920_v51  ;;  %v393_v16 = vsub.f32 %v373_v41, %v1252_v63 }
 0x182   : > { %925 = vlog2.f32 %v277_v48 }
 0x183   : > { %v1255_v6 = vadd.f32 %v289_v56, %v1169_v26  ;;  %v477_v32 = vrot.slane %v393_v16, %v1273_v19 }
 0x184   : > { %v922_v52 = vpop.eup %921 }
 0x185   : > { %v280_v50 = vpop.xlane.xlu1 %279  ;;  %v291_v59 = vmul.f32 0.6931472, %v922_v52  ;;  %v394_v22 = vsub.f32 %v376_v42, %v1255_v6 }
 0x186   : > { %927 = vlog2.f32 %v280_v50 }
 0x187   : > { %v1262_v11 = vadd.f32 %v291_v59, %v1183_v34  ;;  %v392_v34 = vsub.f32 %v370_v30, %v1259_v9  ;;  %v481_v35 = vrot.slane %v394_v22, %v1273_v19 }
 0x188   : > { %v924_v54 = vpop.eup %923 }
 0x189   : > { %v283_v57 = vpop.xlane.xlu1 %282  ;;  %v293_v60 = vmul.f32 0.6931472, %v924_v54  ;;  %v395_v28 = vsub.f32 %v379_v17, %v1262_v11  ;;  %v473_v36 = vrot.slane %v392_v34, %v1273_v19 }
 0x18a   : > { %929 = vlog2.f32 %v283_v57 }
 0x18b   : > { %v1265_v13 = vadd.f32 %v293_v60, %v1160_v21  ;;  %v485_v2 = vrot.slane %v395_v28, %v1273_v19  ;;  %v502_v4 = vsel %vm446_vm4, %v477_v32, %v473_v36 }
 0x18c   : > { %v926_v61 = vpop.eup %925  ;;  %v503_v41 = vsel %vm448_vm5, %v481_v35, %v502_v4 }
 0x18d   : > { %v295_v0 = vmul.f32 0.6931472, %v926_v61  ;;  %v382_v3 = vpop.xlane.xlu1 %381  ;;  %v504_v43 = vsel %vm450_vm6, %v485_v2, %v503_v41 }
 0x18e   : > { %v396_v21 = vsub.f32 %v382_v3, %v1265_v13 }
 0x18f   : > { %v1268_v20 = vadd.f32 %v295_v0, %v1194_v44 }
 0x190   : > { %v928_v15 = vpop.eup %927 }
 0x191   : > { %v297_v26 = vmul.f32 0.6931472, %v928_v15  ;;  %v385_v27 = vpop.xlane.xlu1 %384  ;;  %v320_v15 = vmul.f32 %v1227_v23, %v1111_v1 }
 0x192   : > { %v397_v31 = vsub.f32 %v385_v27, %v1268_v20 }
 0x193   : > { %v1279_v29 = vadd.f32 %v297_v26, %v1164_v24  ;;  %v489_v24 = vrot.slane %v396_v21, %v1273_v19  ;;  %v328_v16 = vsel %vm211_vm0, %v320_v15, 0.0 }
 0x194   : > { %v930_v44 = vpop.eup %929  ;;  %v493_v39 = vrot.slane %v397_v31, %v1273_v19 }
 0x195   : > { %v299_v33 = vmul.f32 0.6931472, %v930_v44  ;;  %v388_v18 = vpop.xlane.xlu1 %387 }
 0x196   : > { %v398_v37 = vsub.f32 %v388_v18, %v1279_v29 }
 0x197   : > { %v1289_v38 = vadd.f32 %v299_v33, %v1202_v53  ;;  %v505_v53 = vsel %vm452_vm7, %v489_v24, %v504_v43  ;;  %v333_v24 = vpop.xlane.xlu0 %332 }
 0x198   : > { %v497_v40 = vrot.slane %v398_v37, %v1273_v19  ;;  %v506_v46 = vsel %vm454_vm8, %v493_v39, %v505_v53  ;;  %v353_v4 = vsub.f32 %v333_v24, %v1252_v63 }
 0x199   : > { %v391_v30 = vpop.xlane.xlu1 %390 }
 0x19a   : > { %v399_v42 = vsub.f32 %v391_v30, %v1289_v38  ;;  %v507_v8 = vsel %vm456_vm9, %v497_v40, %v506_v46  ;;  %v421_v43 = vrot.slane %v353_v4, %v1273_v19 }
 0x19b   : > { %v336_v39 = vpop.xlane.xlu0 %335 }
 0x19c   : > { %v501_v45 = vrot.slane %v399_v42, %v1273_v19  ;;  %v354_v40 = vsub.f32 %v336_v39, %v1255_v6  ;;  %v325_v6 = vmul.f32 %v1227_v23, %v1129_v10 }
 0x19e   : > { %v508_v47 = vsel %vm458_vm10, %v501_v45, %v507_v8  ;;  %v425_v45 = vrot.slane %v354_v40, %v1273_v19 }
 0x19f   : > { %515 = vst.msk [vmem:[#allocation3] sm:$0xff] %vm512_vm11, %v508_v47  ;;  %v342_v41 = vpop.xlane.xlu0 %341 }
 0x1a0   : > { %v356_v46 = vsub.f32 %v342_v41, %v1265_v13  ;;  %v327_v13 = vmul.f32 %v1227_v23, %v1137_v14 }
 0x1a2   : > { %v433_v12 = vrot.slane %v356_v46, %v1273_v19 }
 0x1a6   : > { %v521_v48 = vld [vmem:[#allocation3] sm:$0x1] }
 0x1a7   : > { %524 = vrot.lane.b32.xlu1 %v521_v48, %s1046_s13 }
 0x219   : > { %v525_v50 = vpop.permute.xlu1 %524 }
 0x21a   : > { %v528_v51 = vsel %vm527_vm12, -1e+30, %v525_v50  ;;  %v343_v50 = vsel %vm211_vm0, %v325_v6, 0.0 }
 0x21b   : > { %v539_v52 = vadd.f32 %v538_v49, %v528_v51  ;;  %530 = vrot.lane.b32.xlu1 %v528_v51, %s1046_s13 }
 0x21d   : > { %v540_v54 = vmax.f32 %v539_v52, %v1213_v62 }
 0x21f   : > { %v541_v55 = vsub.f32 %v539_v52, %v540_v54  ;;  %v544_v56 = vsub.f32 %v1213_v62, %v540_v54  ;;  %v323_v62 = vmul.f32 %v1227_v23, %v1119_v5 }
 0x221   : > { %v542_v57 = vmul.f32 1.442695, %v541_v55  ;;  %v545_v58 = vmul.f32 1.442695, %v544_v56  ;;  %v337_v17 = vsel %vm211_vm0, %v323_v62, 0.0 }
 0x223   : > { %931 = vpow2.f32 %v542_v57 }
 0x224   : > { %933 = vpow2.f32 %v545_v58 }
 0x22d   : > { %v932_v59 = vpop.eup %931 }
 0x22e   : > { %v934_v60 = vpop.eup %933 }
 0x22f   : > { %v547_v61 = vadd.f32 %v934_v60, %v932_v59 }
 0x231   : > { %935 = vlog2.f32 %v547_v61 }
 0x23b   : > { %v936_v0 = vpop.eup %935 }
 0x23c   : > { %v549_v3 = vmul.f32 0.6931472, %v936_v0 }
 0x23e   : > { %v550_v7 = vadd.f32 %v549_v3, %v540_v54 }
 0x240   : > { %559 = vrot.lane.b32.xlu1 %v550_v7, %s1047_s14 }
 0x264   : > { %329 = vadd.xlane.f32.xlu1 %v328_v16 }
 0x268   : > { %338 = vadd.xlane.f32.xlu1 %v337_v17 }
 0x28d   : > { %v531_v26 = vpop.permute.xlu1 %530 }
 0x28e   : > { %v533_v27 = vsel %vm527_vm12, 0.0, %v531_v26 }
 0x28f   : > { %v551_v22 = vadd.f32 %v533_v27, %v528_v51  ;;  %v348_v27 = vpop.xlane.xlu0 %347 }
 0x291   : > { %553 = vrot.lane.b32.xlu1 %v551_v22, %s1047_s14 }
 0x2b2   : > { %v560_v34 = vpop.permute.xlu1 %559 }
 0x2b3   : > { %v562_v28 = vsel %vm556_vm13, -1e+30, %v560_v34 }
 0x2b4   : > { %v563_v21 = vadd.f32 %v562_v28, %v551_v22 }
 0x2b6   : > { %v564_v1 = vmax.f32 %v563_v21, %v550_v7 }
 0x2b8   : > { %v565_v44 = vsub.f32 %v563_v21, %v564_v1  ;;  %v568_v31 = vsub.f32 %v550_v7, %v564_v1  ;;  %v596_v7 = vstv %s595_s18 }
 0x2b9   : > { %vm1346_vm15 = vcmp.eq.s32.totalorder %v596_v7, 1 }
 0x2ba   : > { %v566_v32 = vmul.f32 1.442695, %v565_v44  ;;  %v569_v33 = vmul.f32 1.442695, %v568_v31 }
 0x2bc   : > { %937 = vpow2.f32 %v566_v32 }
 0x2bd   : > { %939 = vpow2.f32 %v569_v33 }
 0x2c6   : > { %v938_v5 = vpop.eup %937 }
 0x2c7   : > { %v940_v18 = vpop.eup %939 }
 0x2c8   : > { %v571_v35 = vadd.f32 %v940_v18, %v938_v5 }
 0x2ca   : > { %941 = vlog2.f32 %v571_v35 }
 0x2d4   : > { %v942_v36 = vpop.eup %941 }
 0x2d5   : > { %v573_v2 = vmul.f32 0.6931472, %v942_v36 }
 0x2d7   : > { %v574_v37 = vadd.f32 %v573_v2, %v564_v1 }
 0x2d9   : > { %577 = vrot.lane.b32.xlu1 %v574_v37, %s1048_s15 }
 0x2f1   : > { %v330_v30 = vpop.xlane.xlu1 %329 }
 0x2f2   : > { %v352_v42 = vsub.f32 %v330_v30, %v1259_v9 }
 0x2f4   : > { %v417_v53 = vrot.slane %v352_v42, %v1273_v19 }
 0x2f5   : > { %v339_v8 = vpop.xlane.xlu1 %338 }
 0x2f6   : > { %v447_v47 = vsel %vm446_vm4, %v421_v43, %v417_v53  ;;  %v355_v63 = vsub.f32 %v339_v8, %v1262_v11  ;;  %v349_v11 = vsel %vm211_vm0, %v327_v13, 0.0 }
 0x2f7   : > { %v449_v48 = vsel %vm448_vm5, %v425_v45, %v447_v47 }
 0x2f8   : > { %v429_v9 = vrot.slane %v355_v63, %v1273_v19 }
 0x2fa   : > { %v451_v49 = vsel %vm450_vm6, %v429_v9, %v449_v48 }
 0x2fb   : > { %v453_v51 = vsel %vm452_vm7, %v433_v12, %v451_v49 }
 0x2fd   : > { %344 = vadd.xlane.f32.xlu1 %v343_v50 }
 0x301   : > { %350 = vadd.xlane.f32.xlu1 %v349_v11 }
 0x303   : > { %v554_v10 = vpop.permute.xlu1 %553 }
 0x304   : > { %v557_v52 = vsel %vm556_vm13, 0.0, %v554_v10 }
 0x305   : > { %v575_v54 = vadd.f32 %v557_v52, %v551_v22  ;;  %v358_v22 = vsub.f32 %v348_v27, %v1279_v29 }
 0x307   : > { %v441_v1 = vrot.slane %v358_v22, %v1273_v19 }
 0x34b   : > { %v578_v55 = vpop.permute.xlu1 %577 }
 0x34c   : > { %v581_v56 = vsel %vm580_vm14, -1e+30, %v578_v55 }
 0x34d   : > { %v582_v57 = vadd.f32 %v581_v56, %v575_v54 }
 0x34f   : > { %v583_v58 = vmax.f32 %v582_v57, %v574_v37 }
 0x351   : > { %v584_v14 = vsub.f32 %v582_v57, %v583_v58  ;;  %v587_v23 = vsub.f32 %v574_v37, %v583_v58 }
 0x353   : > { %v585_v59 = vmul.f32 1.442695, %v584_v14  ;;  %v588_v60 = vmul.f32 1.442695, %v587_v23 }
 0x355   : > { %943 = vpow2.f32 %v585_v59 }
 0x356   : > { %945 = vpow2.f32 %v588_v60 }
 0x35f   : > { %v944_v61 = vpop.eup %943 }
 0x360   : > { %v946_v0 = vpop.eup %945 }
 0x361   : > { %v590_v3 = vadd.f32 %v946_v0, %v944_v61 }
 0x363   : > { %947 = vlog2.f32 %v590_v3 }
 0x36d   : > { %v948_v15 = vpop.eup %947 }
 0x36e   : > { %v592_v16 = vmul.f32 0.6931472, %v948_v15 }
 0x370   : > { %v593_v17 = vadd.f32 %v592_v16, %v583_v58  }
 0x372   : > { %v598_v26 = vsel %vm1346_vm15, %v593_v17, -1e+30  }
 0x38a   : > { %v345_v34 = vpop.xlane.xlu1 %344 }
 0x38b   : > { %v357_v28 = vsub.f32 %v345_v34, %v1268_v20 }
 0x38d   : > { %v437_v21 = vrot.slane %v357_v28, %v1273_v19 }
 0x38e   : > { %v351_v44 = vpop.xlane.xlu1 %350 }
 0x38f   : > { %v455_v31 = vsel %vm454_vm8, %v437_v21, %v453_v51  ;;  %v359_v32 = vsub.f32 %v351_v44, %v1289_v38 }
 0x390   : > { %v457_v33 = vsel %vm456_vm9, %v441_v1, %v455_v31 }
 0x391   : > { %v445_v5 = vrot.slane %v359_v32, %v1273_v19 }
 0x393   : > { %v459_v18 = vsel %vm458_vm10, %v445_v5, %v457_v33 }
 0x394   : > { %513 = vst.msk [vmem:[#allocation2] sm:$0xff] %vm512_vm11, %v459_v18 }
 0x395 LB: >> { %s610_s20 = scalar_lea.vmem [#allocation3], %s1039_s19  ;;  %s1049_s21 = smov 1   ;;  %s1039_s19 = sphi %s1366_s19, %s604_s19   ;;  %v1035_v17 = vphi %v593_v17, %v680_v17   ;;  %v1031_v26 = vphi %v598_v26, %v1414_v26  }
 0x396   : >> { %v611_v20 = vld [vmem:[%s610_s20] sm:$0x1]  ;;  %s829_s22 = scalar_lea.vmem [#allocation2], %s1039_s19  ;;  %s1050_s23 = smov 2  }
 0x397   : >> { %614 = vrot.lane.b32.xlu0 %v611_v20, %s1049_s21  ;;  %s1051_s0 = smov 4   ;;  %s823_s1 = sadd.s32 4294967295, %s1343_s17 }
 0x398   : >> { %p682_p2 = scmp.eq.s32.totalorder %s1039_s19, %s823_s1  ;;  %s604_s19 = sadd.s32 1, %s1039_s19  }
 0x399   : >> { %p601_p3 = scmp.ge.s32.totalorder %s604_s19, 8  }
 0x39a   : >> { %s683_s27 = scalar_select %p682_p2, 1, 0 }
 0x39b   : >> { %v831_v19 = vld [vmem:[%s829_s22 - $0x1] sm:$0x1]  ;;  %v687_v21 = vstv (%p601_p3), %s1338_s16  ;;  %vm690_vm2 = vcmask (%p601_p3), 32768   ;;  %s832_s28 = scalar_lea.vmem (%p601_p3), [#allocation2], %s1343_s17 }
 0x39c   : >> { %v612_v29 = vadd.f32 %v1035_v17, %v831_v19  ;;  %v684_v27 = vstv %s683_s27  ;;  %vm688_vm3 = vcmp.eq.s32.totalorder (%p601_p3), %v1167_v25, %v687_v21  ;;  %v834_v1 = vld [vmem:[%s832_s28 - $0x1] sm:$0x1] (%p601_p3) }
 0x39d   : >> { %vm685_vm0 = vcmp.eq.s32.totalorder %v684_v27, 1  ;;  %v704_v31 = vsel (%p601_p3), %vm688_vm3, %v834_v1, 0.0 }
 0x39e   : >> { %624 = vrot.lane.b32.xlu0 %v612_v29, %s1049_s21  ;;  %v705_v33 = vsel (%p601_p3), %vm690_vm2, %v704_v31, 0.0 }
 0x409   : >> { %v615_v38 = vpop.permute.xlu0 %614 }
 0x40a   : >> { %v617_v35 = vsel %vm527_vm12, -1e+30, %v615_v38 }
 0x40b   : >> { %619 = vrot.lane.b32.xlu1 %v617_v35, %s1049_s21 }
 0x410   : >> { %v625_v36 = vpop.permute.xlu0 %624 }
 0x411   : >> { %v627_v2 = vsel %vm527_vm12, -1e+30, %v625_v36 }
 0x412   : >> { %v628_v37 = vadd.f32 %v627_v2, %v617_v35 }
 0x414   : >> { %v629_v24 = vmax.f32 %v628_v37, %v612_v29 }
 0x416   : >> { %v630_v39 = vsub.f32 %v628_v37, %v629_v24  ;;  %v633_v4 = vsub.f32 %v612_v29, %v629_v24 }
 0x418   : >> { %v631_v40 = vmul.f32 1.442695, %v630_v39  ;;  %v634_v30 = vmul.f32 1.442695, %v633_v4 }
 0x41a   : >> { %949 = vpow2.f32 %v631_v40 }
 0x41b   : >> { %951 = vpow2.f32 %v634_v30 }
 0x424   : >> { %v950_v41 = vpop.eup %949 }
 0x425   : >> { %v952_v42 = vpop.eup %951 }
 0x426   : >> { %v636_v43 = vadd.f32 %v952_v42, %v950_v41 }
 0x428   : >> { %953 = vlog2.f32 %v636_v43 }
 0x432   : >> { %v954_v53 = vpop.eup %953 }
 0x433   : >> { %v638_v45 = vmul.f32 0.6931472, %v954_v53 }
 0x435   : >> { %v639_v46 = vadd.f32 %v638_v45, %v629_v24 }
 0x437   : >> { %647 = vrot.lane.b32.xlu1 %v639_v46, %s1050_s23 }
 0x47d   : >> { %v620_v8 = vpop.permute.xlu1 %619 }
 0x47e   : >> { %v622_v47 = vsel %vm527_vm12, 0.0, %v620_v8 }
 0x47f   : >> { %v640_v63 = vadd.f32 %v622_v47, %v617_v35 }
 0x481   : >> { %642 = vrot.lane.b32.xlu0 %v640_v63, %s1050_s23 }
 0x4a9   : >> { %v648_v6 = vpop.permute.xlu1 %647 }
 0x4aa   : >> { %v650_v48 = vsel %vm556_vm13, -1e+30, %v648_v6 }
 0x4ab   : >> { %v651_v9 = vadd.f32 %v650_v48, %v640_v63 }
 0x4ad   : >> { %v652_v12 = vmax.f32 %v651_v9, %v639_v46 }
 0x4af   : >> { %v653_v49 = vsub.f32 %v651_v9, %v652_v12  ;;  %v656_v50 = vsub.f32 %v639_v46, %v652_v12 }
 0x4b1   : >> { %v654_v13 = vmul.f32 1.442695, %v653_v49  ;;  %v657_v51 = vmul.f32 1.442695, %v656_v50 }
 0x4b3   : >> { %955 = vpow2.f32 %v654_v13 }
 0x4b4   : >> { %957 = vpow2.f32 %v657_v51 }
 0x4bd   : >> { %v956_v11 = vpop.eup %955 }
 0x4be   : >> { %v958_v10 = vpop.eup %957 }
 0x4bf   : >> { %v659_v52 = vadd.f32 %v958_v10, %v956_v11 }
 0x4c1   : >> { %959 = vlog2.f32 %v659_v52 }
 0x4cb   : >> { %v960_v54 = vpop.eup %959 }
 0x4cc   : >> { %v661_v55 = vmul.f32 0.6931472, %v960_v54 }
 0x4ce   : >> { %v662_v56 = vadd.f32 %v661_v55, %v652_v12 }
 0x4d0   : >> { %665 = vrot.lane.b32.xlu1 %v662_v56, %s1051_s0 }
 0x4f3   : >> { %v643_v57 = vpop.permute.xlu0 %642 }
 0x4f4   : >> { %v645_v58 = vsel %vm556_vm13, 0.0, %v643_v57 }
 0x4f5   : >> { %v663_v14 = vadd.f32 %v645_v58, %v640_v63 }
 0x542   : >> { %v666_v23 = vpop.permute.xlu1 %665 }
 0x543   : >> { %v668_v59 = vsel %vm580_vm14, -1e+30, %v666_v23 }
 0x544   : >> { %v669_v60 = vadd.f32 %v668_v59, %v663_v14 }
 0x546   : >> { %v670_v61 = vmax.f32 %v669_v60, %v662_v56 }
 0x548   : >> { %v671_v0 = vsub.f32 %v669_v60, %v670_v61  ;;  %v674_v3 = vsub.f32 %v662_v56, %v670_v61 }
 0x54a   : >> { %v672_v7 = vmul.f32 1.442695, %v671_v0  ;;  %v675_v15 = vmul.f32 1.442695, %v674_v3 }
 0x54c   : >> { %961 = vpow2.f32 %v672_v7 }
 0x54d   : >> { %963 = vpow2.f32 %v675_v15 }
 0x556   : >> { %v962_v16 = vpop.eup %961 }
 0x557   : >> { %v964_v62 = vpop.eup %963 }
 0x558   : >> { %v677_v17 = vadd.f32 %v964_v62, %v962_v16 }
 0x55a   : >> { %965 = vlog2.f32 %v677_v17 }
 0x564   : >> { %v966_v22 = vpop.eup %965  ;;  %603 = sbr.rel (!%p601_p3) target bundleno = 917 (0x395), region = 81 }
 0x565   : >> { %v679_v34 = vmul.f32 0.6931472, %v966_v22 }
 0x567   : >> { %v680_v17 = vadd.f32 %v679_v34, %v670_v61  }
 0x569   : >> { %v686_v28 = vsel %vm685_vm0, %v680_v17, %v1031_v26  }
 0x56a   : >> { %v1414_v26 = vmov %v686_v28  ;;  %v689_v44 = vsel (%p601_p3), %vm688_vm3, %v686_v28, 0.0 }
 0x56b   : > { %v691_v32 = vsel %vm690_vm2, %v689_v44, 0.0 }
 0x56c   : > { %692 = vadd.xlane.f32.xlu0 %v691_v32 }
 0x570   : > { %706 = vadd.xlane.f32.xlu0 %v705_v33 }
 0x5f9   : > { %v693_v5 = vpop.xlane.xlu0 %692 }
 0x5fa   : > { %v694_v18 = vrot.slane %v693_v5, 4 }
 0x5fc   : > { %v695_v20 = vadd.f32 %v694_v18, %v693_v5 }
 0x5fd   : > { %v707_v19 = vpop.xlane.xlu0 %706 }
 0x5fe   : > { %v696_v29 = vrot.slane %v695_v20, 2  ;;  %v708_v38 = vrot.slane %v707_v19, 4 }
 0x600   : > { %v709_v26 = vadd.f32 %v708_v38, %v707_v19  ;;  %v697_v35 = vadd.f32 %v696_v29, %v695_v20 }
 0x602   : > { %v710_v36 = vrot.slane %v709_v26, 2  ;;  %v698_v2 = vrot.slane %v697_v35, 1 }
 0x604   : > { %v711_v25 = vadd.f32 %v710_v36, %v709_v26  ;;  %v699_v37 = vadd.f32 %v698_v2, %v697_v35 }
 0x606   : > { %835 = vpush %v699_v37  ;;  %v712_v24 = vrot.slane %v711_v25, 1 }
 0x608   : > { %v713_v39 = vadd.f32 %v712_v24, %v711_v25 }
 0x60a   : > { %837 = vpush %v713_v39 }
 0x637   : > { %s836_s29 = spop %835 }
 0x63b   : > { %s838_s30 = spop %837 }
 0x63c   : > { %s715_s5 = sadd.f32 %s838_s30, %s836_s29 }
 0x63e   : > { %s716_s6 = ssub.f32 0.0, %s715_s5 }
 0x640   : > { %v717_v4 = vstv %s716_s6 }
 0x641   : > { %719 = vst.msk [vmem:[%s1151_s12] sm:$0x1] %vm201_vm1, %v717_v4 }
 0x642 PF: > { %s24_s25 = sadd.s32 1, %s1027_s25   ;;  %s1415_s1 = smov %s1023_s24 }
 0x643   : > { %p21_p4 = scmp.ge.s32.totalorder %s24_s25, 4   ;;  %s1416_s24 = smov %s1418_s26 }
 0x645   :  { %23 = sbr.rel (!%p21_p4) target bundleno = 27 (0x1b), region = 92 }

</bundles_post_ra>
